<compile_context>
chip_gen: v7x
topology: tpu7x:2x2x1
jax: 0.10.0
libtpu: 0.0.40
codegen_flags: <defaults>
</compile_context>

<pallas_src>
import math
import jax
import jax.numpy as jnp
from jax.experimental import pallas as pl
from jax.experimental.pallas import tpu as pltpu

STATE_DIM = 16
ACTION_DIM = 8
LATENT_DIM = 32
HIDDEN_DIM = 64
BATCH = 2
PAD_BATCH = 8          # batch tile = one f32 sublane tile
ACT_PAD = 16           # action one-hot padded to a 16-row bf16 weight block
OUT_LANES = 128        # lane-dense output slab: [next_state | uncertainty | 0-pad]

# --- row offsets of each (in, out) weight block inside the packed bf16 slab ---
# every block starts on a 16-row boundary (bf16 sublane packing) and column 0.
W_ENC1 = 0      # (16, 64)   state -> hidden
W_LATF = 16     # (64, 256)  enc_w2 @ [tr_w1[:L] | lstm0 i,g,o[:L]]   (pre-multiplied)
W_ACT = 80      # (16, 256)  [tr_w1[L:] | lstm0 i,g,o[L:]]; row 8 holds fused-gate bias
W_TR2 = 96      # (64, 64)
W_TRDEC = 160   # (64, 64)   tr_w3 @ dec_w1                           (pre-multiplied)
W_DEC2 = 224    # (64, 16)
W_L1 = 288      # (64, 192)  lstm1 i,g,o
W_UNC1 = 352    # (64, 32)
W_UNC2 = 416    # (32, 32)
W_ROWS, W_COLS = 448, 256

# --- bias slab (f32, (64, 256)): each bias pre-broadcast to its own 8-row group ---
B_ENC1, B_TR2, B_TRDEC, B_DEC2, B_L1, B_UNC1, B_UNC2 = range(7)
B_SLAB_ROWS = 64


def world_model_kernel(state_ref, act_ref, w_ref, b_ref, out_ref):
    f32 = jnp.float32
    bf16 = jnp.bfloat16
    H = HIDDEN_DIM

    def mm(x, r0, rows, cols):
        # bf16 x bf16 -> f32 accumulation: native full-rate MXU path.
        return jnp.dot(x.astype(bf16), w_ref[r0:r0 + rows, 0:cols],
                       preferred_element_type=f32)

    def b(grp, cols):
        # biases are pre-broadcast to 8 sublanes -> plain vreg add.
        return b_ref[grp * 8:(grp + 1) * 8, 0:cols]

    state = state_ref[...]                      # (8, 16) f32
    act = act_ref[...]                          # (8, 16): one-hot, lane 8 == 1.0 (bias lane)

    # --- state encoder layer 1 ---
    h = jnp.maximum(mm(state, W_ENC1, STATE_DIM, H) + b(B_ENC1, H), 0.0)

    # --- fused shared-LHS pass (encoder layer 2 pre-multiplied into it):
    #     columns = [transition L1 (64) | LSTM0 i,g,o (192)]; gate bias rides in
    #     the act bias lane, so no separate bias add on the widest intermediate.
    g = mm(h, W_LATF, H, 4 * H) + mm(act, W_ACT, ACT_PAD, 4 * H)

    # --- transition model (layer 3 pre-multiplied with decoder layer 1) ---
    t = jnp.maximum(g[:, 0:H], 0.0)
    t = jnp.maximum(mm(t, W_TR2, H, H) + b(B_TR2, H), 0.0)
    d = jnp.maximum(mm(t, W_TRDEC, H, H) + b(B_TRDEC, H), 0.0)
    next_state = mm(d, W_DEC2, H, STATE_DIM) + b(B_DEC2, STATE_DIM)

    # --- LSTM layer 0 (seq_len 1, h0=c0=0: W_hh dropped, b_hh folded, f-gate dead)
    i0 = jax.nn.sigmoid(g[:, H:2 * H])
    g0 = jnp.tanh(g[:, 2 * H:3 * H])
    o0 = jax.nn.sigmoid(g[:, 3 * H:4 * H])
    h_l0 = o0 * jnp.tanh(i0 * g0)

    # --- LSTM layer 1 (i, g, o columns only) ---
    g1 = mm(h_l0, W_L1, H, 3 * H) + b(B_L1, 3 * H)
    i1 = jax.nn.sigmoid(g1[:, 0:H])
    gg1 = jnp.tanh(g1[:, H:2 * H])
    o1 = jax.nn.sigmoid(g1[:, 2 * H:3 * H])
    h_l1 = o1 * jnp.tanh(i1 * gg1)

    # --- uncertainty head: Linear -> ReLU -> Linear -> Softplus (threshold 20) ---
    u = jnp.maximum(mm(h_l1, W_UNC1, H, H // 2) + b(B_UNC1, H // 2), 0.0)
    u = mm(u, W_UNC2, H // 2, LATENT_DIM) + b(B_UNC2, LATENT_DIM)
    unc = jnp.where(u > 20.0, u, jnp.log1p(jnp.exp(jnp.minimum(u, 20.0))))

    # lane-dense (8, 128) write-back: [next_state (16) | uncertainty (32) | zeros (80)]
    pad = jnp.zeros((PAD_BATCH, OUT_LANES - STATE_DIM - LATENT_DIM), f32)
    out_ref[...] = jnp.concatenate([next_state, unc, pad], axis=1)


def make_raw_params(key):
    """PyTorch-equivalent init: Linear -> xavier_uniform W / zero b,
    LSTM -> U(-1/sqrt(H), 1/sqrt(H)). Weights stored (in, out)."""
    H, L, A, S = HIDDEN_DIM, LATENT_DIM, ACTION_DIM, STATE_DIM

    def xavier(key, out_dim, in_dim):
        limit = math.sqrt(6.0 / (in_dim + out_dim))
        return jax.random.uniform(key, (out_dim, in_dim), jnp.float32, -limit, limit).T

    def lstm_u(key, shape):
        k = 1.0 / math.sqrt(H)
        return jax.random.uniform(key, shape, jnp.float32, -k, k)

    keys = jax.random.split(key, 20)
    p = {
        "enc_w1": xavier(keys[0], H, S), "enc_b1": jnp.zeros((H,), jnp.float32),
        "enc_w2": xavier(keys[1], L, H), "enc_b2": jnp.zeros((L,), jnp.float32),
        "tr_w1": xavier(keys[2], H, L + A), "tr_b1": jnp.zeros((H,), jnp.float32),
        "tr_w2": xavier(keys[3], H, H), "tr_b2": jnp.zeros((H,), jnp.float32),
        "tr_w3": xavier(keys[4], L, H), "tr_b3": jnp.zeros((L,), jnp.float32),
        "dec_w1": xavier(keys[5], H, L), "dec_b1": jnp.zeros((H,), jnp.float32),
        "dec_w2": xavier(keys[6], S, H), "dec_b2": jnp.zeros((S,), jnp.float32),
    }
    # LSTM: W_hh tensors drawn for key determinism but unused (h0 = c0 = 0).
    p["l0_wih"] = lstm_u(keys[7], (4 * H, L + A)).T       # (L+A, 4H)
    _ = lstm_u(keys[8], (4 * H, H))
    p["l0_bih"] = lstm_u(keys[9], (4 * H,))
    p["l0_bhh"] = lstm_u(keys[10], (4 * H,))
    p["l1_wih"] = lstm_u(keys[11], (4 * H, H)).T          # (H, 4H)
    _ = lstm_u(keys[12], (4 * H, H))
    p["l1_bih"] = lstm_u(keys[13], (4 * H,))
    p["l1_bhh"] = lstm_u(keys[14], (4 * H,))
    p["unc_w1"] = xavier(keys[15], H // 2, H)
    p["unc_b1"] = jnp.zeros((H // 2,), jnp.float32)
    p["unc_w2"] = xavier(keys[16], L, H // 2)
    p["unc_b2"] = jnp.zeros((L,), jnp.float32)
    return p


def pack_params(raw):
    """Fuse shared-LHS weights, pre-multiply linear->linear pairs, drop dead LSTM
    f-gates, fold the fused-gate bias into the action bias lane, pack into two slabs."""
    H, L, A = HIDDEN_DIM, LATENT_DIM, ACTION_DIM
    f32 = jnp.float32
    igo = lambda x: jnp.concatenate([x[..., 0:H], x[..., 2 * H:4 * H]], axis=-1)

    l0_b = igo(raw["l0_bih"] + raw["l0_bhh"])                    # (3H,)
    l1_b = igo(raw["l1_bih"] + raw["l1_bhh"])                    # (3H,)
    l0_w = igo(raw["l0_wih"])                                    # (L+A, 3H)
    l1_w = igo(raw["l1_wih"])                                    # (H, 3H)

    # shared-LHS fusion: columns = [transition L1 (64) | LSTM0 i,g,o (192)]
    w_lat = jnp.concatenate([raw["tr_w1"][:L], l0_w[:L]], axis=1)    # (32, 256)
    w_act = jnp.concatenate([raw["tr_w1"][L:], l0_w[L:]], axis=1)    # (8, 256)
    b_fused = jnp.concatenate([raw["tr_b1"], l0_b])                  # (256,)

    # linear->linear pre-multiplication (no nonlinearity between), done in f32:
    w_latf = raw["enc_w2"] @ w_lat                                   # (64, 256)
    b_gate = raw["enc_b2"] @ w_lat + b_fused                         # (256,)
    w_trdec = raw["tr_w3"] @ raw["dec_w1"]                           # (64, 64)
    b_trdec = raw["tr_b3"] @ raw["dec_w1"] + raw["dec_b1"]           # (64,)

    # action block: rows 0..7 one-hot weights, row 8 = fused-gate bias (act lane 8 == 1.0)
    w_actb = (jnp.zeros((ACT_PAD, W_COLS), f32)
              .at[:A, :].set(jnp.pad(w_act, ((0, 0), (0, 0))))
              .at[A, :].set(b_gate))

    wbuf = jnp.zeros((W_ROWS, W_COLS), f32)

    def put_w(buf, r0, wm):
        r, c = wm.shape
        return buf.at[r0:r0 + r, 0:c].set(wm)

    wbuf = put_w(wbuf, W_ENC1, raw["enc_w1"])
    wbuf = put_w(wbuf, W_LATF, w_latf)
    wbuf = put_w(wbuf, W_ACT, w_actb)
    wbuf = put_w(wbuf, W_TR2, raw["tr_w2"])
    wbuf = put_w(wbuf, W_TRDEC, w_trdec)
    wbuf = put_w(wbuf, W_DEC2, raw["dec_w2"])
    wbuf = put_w(wbuf, W_L1, l1_w)
    wbuf = put_w(wbuf, W_UNC1, raw["unc_w1"])
    wbuf = put_w(wbuf, W_UNC2, raw["unc_w2"])

    bbuf = jnp.zeros((B_SLAB_ROWS, W_COLS), f32)

    def put_b(buf, grp, bv):
        n = bv.shape[0]
        return buf.at[grp * 8:(grp + 1) * 8, 0:n].set(jnp.broadcast_to(bv, (8, n)))

    bbuf = put_b(bbuf, B_ENC1, raw["enc_b1"])
    bbuf = put_b(bbuf, B_TR2, raw["tr_b2"])
    bbuf = put_b(bbuf, B_TRDEC, b_trdec)
    bbuf = put_b(bbuf, B_DEC2, raw["dec_b2"])
    bbuf = put_b(bbuf, B_L1, l1_b)
    bbuf = put_b(bbuf, B_UNC1, raw["unc_b1"])
    bbuf = put_b(bbuf, B_UNC2, raw["unc_b2"])

    return {"w": wbuf.astype(jnp.bfloat16), "b": bbuf}


def world_model_forward(params, state, action_ids):
    """state: (B, STATE_DIM) f32; action_ids: (B,) int32 -> (next_state, uncertainty)."""
    bsz = state.shape[0]
    bp = max(PAD_BATCH, -(-bsz // PAD_BATCH) * PAD_BATCH)     # multiple of the 8-row tile
    act_oh = jax.nn.one_hot(action_ids, ACTION_DIM, dtype=jnp.float32)
    state_p = jnp.zeros((bp, STATE_DIM), jnp.float32).at[:bsz].set(state)
    act_p = (jnp.zeros((bp, ACT_PAD), jnp.float32)
             .at[:, ACTION_DIM].set(1.0)                      # constant bias lane
             .at[:bsz, :ACTION_DIM].set(act_oh))

    grid = (bp // PAD_BATCH,)
    out = pl.pallas_call(
        world_model_kernel,
        out_shape=jax.ShapeDtypeStruct((bp, OUT_LANES), jnp.float32),
        grid_spec=pltpu.PrefetchScalarGridSpec(
            num_scalar_prefetch=0,
            grid=grid,
            in_specs=[
                pl.BlockSpec((PAD_BATCH, STATE_DIM), lambda i: (i, 0)),
                pl.BlockSpec((PAD_BATCH, ACT_PAD), lambda i: (i, 0)),
                pl.BlockSpec((W_ROWS, W_COLS), lambda i: (0, 0)),        # weight slab resident
                pl.BlockSpec((B_SLAB_ROWS, W_COLS), lambda i: (0, 0)),   # bias slab resident
            ],
            out_specs=pl.BlockSpec((PAD_BATCH, OUT_LANES), lambda i: (i, 0)),
        ),
        compiler_params=pltpu.CompilerParams(
            dimension_semantics=("parallel",)),   # batch tiles split across TCs on v7x
    )(state_p, act_p, params["w"], params["b"])
    # TODO(synk): for multi-step rollouts (predict_trajectory), add a time grid
    # axis marked "arbitrary" so the weight/bias slabs stay VMEM-resident across
    # steps; that mode must reinstate the LSTM recurrent (W_hh) weights and the
    # forget gate since hidden/cell state would then be carried across steps.
    return out[:bsz, :STATE_DIM], out[:bsz, STATE_DIM:STATE_DIM + LATENT_DIM]


def reference_forward(raw, state, action_ids):
    """Pure-jnp f32 replica of WorldModel.forward (layer-by-layer, full LSTM, h0=c0=0)."""
    f32 = jnp.float32
    H = HIDDEN_DIM
    relu = jax.nn.relu
    act = jax.nn.one_hot(action_ids, ACTION_DIM, dtype=f32)

    latent = relu(state @ raw["enc_w1"] + raw["enc_b1"]) @ raw["enc_w2"] + raw["enc_b2"]
    la = jnp.concatenate([latent, act], axis=-1)
    t = relu(la @ raw["tr_w1"] + raw["tr_b1"])
    t = relu(t @ raw["tr_w2"] + raw["tr_b2"])
    next_latent = t @ raw["tr_w3"] + raw["tr_b3"]
    next_state = (relu(next_latent @ raw["dec_w1"] + raw["dec_b1"]) @ raw["dec_w2"]
                  + raw["dec_b2"])

    def lstm_cell(x, wih, bih, bhh):           # h_prev = c_prev = 0
        g = x @ wih + bih + bhh
        i = jax.nn.sigmoid(g[:, :H])
        f = jax.nn.sigmoid(g[:, H:2 * H])
        gg = jnp.tanh(g[:, 2 * H:3 * H])
        o = jax.nn.sigmoid(g[:, 3 * H:])
        c = f * 0.0 + i * gg
        return o * jnp.tanh(c)

    h0 = lstm_cell(la, raw["l0_wih"], raw["l0_bih"], raw["l0_bhh"])
    h1 = lstm_cell(h0, raw["l1_wih"], raw["l1_bih"], raw["l1_bhh"])
    u = relu(h1 @ raw["unc_w1"] + raw["unc_b1"]) @ raw["unc_w2"] + raw["unc_b2"]
    unc = jnp.where(u > 20.0, u, jnp.log1p(jnp.exp(jnp.minimum(u, 20.0))))
    return next_state, unc


if __name__ == "__main__":
    key = jax.random.PRNGKey(0)
    pkey, skey, akey = jax.random.split(key, 3)
    raw = make_raw_params(pkey)
    params = pack_params(raw)
    state = jax.random.normal(skey, (BATCH, STATE_DIM), jnp.float32)
    action_ids = jax.random.randint(akey, (BATCH,), 0, ACTION_DIM, jnp.int32)

    next_state, uncertainty = jax.block_until_ready(
        world_model_forward(params, state, action_ids))

    assert next_state.shape == (BATCH, STATE_DIM)
    assert uncertainty.shape == (BATCH, LATENT_DIM)
    assert bool(jnp.all(uncertainty >= 0.0))       # softplus output is non-negative

    # compare against the un-quantized f32 layer-by-layer reference
    ref_ns, ref_unc = reference_forward(raw, state, action_ids)
    assert bool(jnp.allclose(next_state, ref_ns, atol=5e-2, rtol=5e-2))
    assert bool(jnp.allclose(uncertainty, ref_unc, atol=5e-2, rtol=5e-2))
    print("KERNEL_OK")
</pallas_src>

<mosaic_0001>
module attributes {stable_mosaic.version = 11 : i64} {
  func.func @world_model_kernel(%arg0: i32, %arg1: memref<8x16xf32, #tpu.memory_space<vmem>>, %arg2: memref<8x16xf32, #tpu.memory_space<vmem>>, %arg3: memref<448x256xbf16, #tpu.memory_space<vmem>>, %arg4: memref<64x256xf32, #tpu.memory_space<vmem>>, %arg5: memref<8x128xf32, #tpu.memory_space<vmem>>) attributes {dimension_semantics = [#tpu.dimension_semantics<parallel>], iteration_bounds = array<i64: 1>, scalar_prefetch = 0 : i64, scratch_operands = 0 : i64, tpu.core_type = #tpu.core_type<tc>, window_params = [{transform_indices = @transform_0, window_bounds = array<i64: 8, 16>}, {transform_indices = @transform_1, window_bounds = array<i64: 8, 16>}, {pipeline_mode = #tpu.pipeline_mode<synchronous>, transform_indices = @transform_2, window_bounds = array<i64: 448, 256>}, {pipeline_mode = #tpu.pipeline_mode<synchronous>, transform_indices = @transform_3, window_bounds = array<i64: 64, 256>}, {transform_indices = @transform_4, window_bounds = array<i64: 8, 128>}]} {
    %c0 = arith.constant 0 : index
    %c0_0 = arith.constant 0 : index
    %0 = vector.load %arg1[%c0, %c0_0] : memref<8x16xf32, #tpu.memory_space<vmem>>, vector<8x16xf32>
    %c0_1 = arith.constant 0 : index
    %c0_2 = arith.constant 0 : index
    %1 = vector.load %arg2[%c0_1, %c0_2] : memref<8x16xf32, #tpu.memory_space<vmem>>, vector<8x16xf32>
    %2 = arith.truncf %0 : vector<8x16xf32> to vector<8x16xbf16>
    %c0_3 = arith.constant 0 : index
    %c0_4 = arith.constant 0 : index
    %3 = vector.load %arg3[%c0_3, %c0_4] : memref<448x256xbf16, #tpu.memory_space<vmem>>, vector<16x64xbf16>
    %cst = arith.constant dense<0.000000e+00> : vector<8x64xf32>
    %4 = tpu.matmul %2, %3, %cst {dimension_numbers = #tpu.dot_dimension_numbers<[1], [0], [0], [1], [0, 0, 1, 1], [], []>} : vector<8x16xbf16>, vector<16x64xbf16>, vector<8x64xf32> -> vector<8x64xf32>
    %c0_5 = arith.constant 0 : index
    %c0_6 = arith.constant 0 : index
    %5 = vector.load %arg4[%c0_5, %c0_6] : memref<64x256xf32, #tpu.memory_space<vmem>>, vector<8x64xf32>
    %6 = arith.addf %4, %5 : vector<8x64xf32>
    %cst_7 = arith.constant 0.000000e+00 : f32
    %7 = vector.broadcast %cst_7 : f32 to vector<8x64xf32>
    %8 = arith.maximumf %6, %7 : vector<8x64xf32>
    %9 = arith.truncf %8 : vector<8x64xf32> to vector<8x64xbf16>
    %c16 = arith.constant 16 : index
    %c0_8 = arith.constant 0 : index
    %10 = vector.load %arg3[%c16, %c0_8] : memref<448x256xbf16, #tpu.memory_space<vmem>>, vector<64x256xbf16>
    %cst_9 = arith.constant dense<0.000000e+00> : vector<8x256xf32>
    %11 = tpu.matmul %9, %10, %cst_9 {dimension_numbers = #tpu.dot_dimension_numbers<[1], [0], [0], [1], [0, 0, 1, 1], [], []>} : vector<8x64xbf16>, vector<64x256xbf16>, vector<8x256xf32> -> vector<8x256xf32>
    %12 = arith.truncf %1 : vector<8x16xf32> to vector<8x16xbf16>
    %c80 = arith.constant 80 : index
    %c0_10 = arith.constant 0 : index
    %13 = vector.load %arg3[%c80, %c0_10] : memref<448x256xbf16, #tpu.memory_space<vmem>>, vector<16x256xbf16>
    %cst_11 = arith.constant dense<0.000000e+00> : vector<8x256xf32>
    %14 = tpu.matmul %12, %13, %cst_11 {dimension_numbers = #tpu.dot_dimension_numbers<[1], [0], [0], [1], [0, 0, 1, 1], [], []>} : vector<8x16xbf16>, vector<16x256xbf16>, vector<8x256xf32> -> vector<8x256xf32>
    %15 = arith.addf %11, %14 : vector<8x256xf32>
    %16 = vector.extract_strided_slice %15 {offsets = [0, 0], sizes = [8, 64], strides = [1, 1]} : vector<8x256xf32> to vector<8x64xf32>
    %cst_12 = arith.constant 0.000000e+00 : f32
    %17 = vector.broadcast %cst_12 : f32 to vector<8x64xf32>
    %18 = arith.maximumf %16, %17 : vector<8x64xf32>
    %19 = arith.truncf %18 : vector<8x64xf32> to vector<8x64xbf16>
    %c96 = arith.constant 96 : index
    %c0_13 = arith.constant 0 : index
    %20 = vector.load %arg3[%c96, %c0_13] : memref<448x256xbf16, #tpu.memory_space<vmem>>, vector<64x64xbf16>
    %cst_14 = arith.constant dense<0.000000e+00> : vector<8x64xf32>
    %21 = tpu.matmul %19, %20, %cst_14 {dimension_numbers = #tpu.dot_dimension_numbers<[1], [0], [0], [1], [0, 0, 1, 1], [], []>} : vector<8x64xbf16>, vector<64x64xbf16>, vector<8x64xf32> -> vector<8x64xf32>
    %c8 = arith.constant 8 : index
    %c0_15 = arith.constant 0 : index
    %22 = vector.load %arg4[%c8, %c0_15] : memref<64x256xf32, #tpu.memory_space<vmem>>, vector<8x64xf32>
    %23 = arith.addf %21, %22 : vector<8x64xf32>
    %cst_16 = arith.constant 0.000000e+00 : f32
    %24 = vector.broadcast %cst_16 : f32 to vector<8x64xf32>
    %25 = arith.maximumf %23, %24 : vector<8x64xf32>
    %26 = arith.truncf %25 : vector<8x64xf32> to vector<8x64xbf16>
    %c160 = arith.constant 160 : index
    %c0_17 = arith.constant 0 : index
    %27 = vector.load %arg3[%c160, %c0_17] : memref<448x256xbf16, #tpu.memory_space<vmem>>, vector<64x64xbf16>
    %cst_18 = arith.constant dense<0.000000e+00> : vector<8x64xf32>
    %28 = tpu.matmul %26, %27, %cst_18 {dimension_numbers = #tpu.dot_dimension_numbers<[1], [0], [0], [1], [0, 0, 1, 1], [], []>} : vector<8x64xbf16>, vector<64x64xbf16>, vector<8x64xf32> -> vector<8x64xf32>
    %c16_19 = arith.constant 16 : index
    %c0_20 = arith.constant 0 : index
    %29 = vector.load %arg4[%c16_19, %c0_20] : memref<64x256xf32, #tpu.memory_space<vmem>>, vector<8x64xf32>
    %30 = arith.addf %28, %29 : vector<8x64xf32>
    %cst_21 = arith.constant 0.000000e+00 : f32
    %31 = vector.broadcast %cst_21 : f32 to vector<8x64xf32>
    %32 = arith.maximumf %30, %31 : vector<8x64xf32>
    %33 = arith.truncf %32 : vector<8x64xf32> to vector<8x64xbf16>
    %c224 = arith.constant 224 : index
    %c0_22 = arith.constant 0 : index
    %34 = vector.load %arg3[%c224, %c0_22] : memref<448x256xbf16, #tpu.memory_space<vmem>>, vector<64x16xbf16>
    %cst_23 = arith.constant dense<0.000000e+00> : vector<8x16xf32>
    %35 = tpu.matmul %33, %34, %cst_23 {dimension_numbers = #tpu.dot_dimension_numbers<[1], [0], [0], [1], [0, 0, 1, 1], [], []>} : vector<8x64xbf16>, vector<64x16xbf16>, vector<8x16xf32> -> vector<8x16xf32>
    %c24 = arith.constant 24 : index
    %c0_24 = arith.constant 0 : index
    %36 = vector.load %arg4[%c24, %c0_24] : memref<64x256xf32, #tpu.memory_space<vmem>>, vector<8x16xf32>
    %37 = arith.addf %35, %36 : vector<8x16xf32>
    %38 = vector.extract_strided_slice %15 {offsets = [0, 64], sizes = [8, 64], strides = [1, 1]} : vector<8x256xf32> to vector<8x64xf32>
    %39 = arith.negf %38 : vector<8x64xf32>
    %40 = math.exp %39 : vector<8x64xf32>
    %cst_25 = arith.constant 1.000000e+00 : f32
    %41 = vector.broadcast %cst_25 : f32 to vector<8x64xf32>
    %42 = arith.addf %41, %40 : vector<8x64xf32>
    %43 = arith.divf %41, %42 : vector<8x64xf32>
    %44 = vector.extract_strided_slice %15 {offsets = [0, 128], sizes = [8, 64], strides = [1, 1]} : vector<8x256xf32> to vector<8x64xf32>
    %45 = math.tanh %44 : vector<8x64xf32>
    %46 = vector.extract_strided_slice %15 {offsets = [0, 192], sizes = [8, 64], strides = [1, 1]} : vector<8x256xf32> to vector<8x64xf32>
    %47 = arith.negf %46 : vector<8x64xf32>
    %48 = math.exp %47 : vector<8x64xf32>
    %cst_26 = arith.constant 1.000000e+00 : f32
    %49 = vector.broadcast %cst_26 : f32 to vector<8x64xf32>
    %50 = arith.addf %49, %48 : vector<8x64xf32>
    %51 = arith.divf %49, %50 : vector<8x64xf32>
    %52 = arith.mulf %43, %45 : vector<8x64xf32>
    %53 = math.tanh %52 : vector<8x64xf32>
    %54 = arith.mulf %51, %53 : vector<8x64xf32>
    %55 = arith.truncf %54 : vector<8x64xf32> to vector<8x64xbf16>
    %c288 = arith.constant 288 : index
    %c0_27 = arith.constant 0 : index
    %56 = vector.load %arg3[%c288, %c0_27] : memref<448x256xbf16, #tpu.memory_space<vmem>>, vector<64x192xbf16>
    %cst_28 = arith.constant dense<0.000000e+00> : vector<8x192xf32>
    %57 = tpu.matmul %55, %56, %cst_28 {dimension_numbers = #tpu.dot_dimension_numbers<[1], [0], [0], [1], [0, 0, 1, 1], [], []>} : vector<8x64xbf16>, vector<64x192xbf16>, vector<8x192xf32> -> vector<8x192xf32>
    %c32 = arith.constant 32 : index
    %c0_29 = arith.constant 0 : index
    %58 = vector.load %arg4[%c32, %c0_29] : memref<64x256xf32, #tpu.memory_space<vmem>>, vector<8x192xf32>
    %59 = arith.addf %57, %58 : vector<8x192xf32>
    %60 = vector.extract_strided_slice %59 {offsets = [0, 0], sizes = [8, 64], strides = [1, 1]} : vector<8x192xf32> to vector<8x64xf32>
    %61 = arith.negf %60 : vector<8x64xf32>
    %62 = math.exp %61 : vector<8x64xf32>
    %cst_30 = arith.constant 1.000000e+00 : f32
    %63 = vector.broadcast %cst_30 : f32 to vector<8x64xf32>
    %64 = arith.addf %63, %62 : vector<8x64xf32>
    %65 = arith.divf %63, %64 : vector<8x64xf32>
    %66 = vector.extract_strided_slice %59 {offsets = [0, 64], sizes = [8, 64], strides = [1, 1]} : vector<8x192xf32> to vector<8x64xf32>
    %67 = math.tanh %66 : vector<8x64xf32>
    %68 = vector.extract_strided_slice %59 {offsets = [0, 128], sizes = [8, 64], strides = [1, 1]} : vector<8x192xf32> to vector<8x64xf32>
    %69 = arith.negf %68 : vector<8x64xf32>
    %70 = math.exp %69 : vector<8x64xf32>
    %cst_31 = arith.constant 1.000000e+00 : f32
    %71 = vector.broadcast %cst_31 : f32 to vector<8x64xf32>
    %72 = arith.addf %71, %70 : vector<8x64xf32>
    %73 = arith.divf %71, %72 : vector<8x64xf32>
    %74 = arith.mulf %65, %67 : vector<8x64xf32>
    %75 = math.tanh %74 : vector<8x64xf32>
    %76 = arith.mulf %73, %75 : vector<8x64xf32>
    %77 = arith.truncf %76 : vector<8x64xf32> to vector<8x64xbf16>
    %c352 = arith.constant 352 : index
    %c0_32 = arith.constant 0 : index
    %78 = vector.load %arg3[%c352, %c0_32] : memref<448x256xbf16, #tpu.memory_space<vmem>>, vector<64x32xbf16>
    %cst_33 = arith.constant dense<0.000000e+00> : vector<8x32xf32>
    %79 = tpu.matmul %77, %78, %cst_33 {dimension_numbers = #tpu.dot_dimension_numbers<[1], [0], [0], [1], [0, 0, 1, 1], [], []>} : vector<8x64xbf16>, vector<64x32xbf16>, vector<8x32xf32> -> vector<8x32xf32>
    %c40 = arith.constant 40 : index
    %c0_34 = arith.constant 0 : index
    %80 = vector.load %arg4[%c40, %c0_34] : memref<64x256xf32, #tpu.memory_space<vmem>>, vector<8x32xf32>
    %81 = arith.addf %79, %80 : vector<8x32xf32>
    %cst_35 = arith.constant 0.000000e+00 : f32
    %82 = vector.broadcast %cst_35 : f32 to vector<8x32xf32>
    %83 = arith.maximumf %81, %82 : vector<8x32xf32>
    %84 = arith.truncf %83 : vector<8x32xf32> to vector<8x32xbf16>
    %c416 = arith.constant 416 : index
    %c0_36 = arith.constant 0 : index
    %85 = vector.load %arg3[%c416, %c0_36] : memref<448x256xbf16, #tpu.memory_space<vmem>>, vector<32x32xbf16>
    %cst_37 = arith.constant dense<0.000000e+00> : vector<8x32xf32>
    %86 = tpu.matmul %84, %85, %cst_37 {dimension_numbers = #tpu.dot_dimension_numbers<[1], [0], [0], [1], [0, 0, 1, 1], [], []>} : vector<8x32xbf16>, vector<32x32xbf16>, vector<8x32xf32> -> vector<8x32xf32>
    %c48 = arith.constant 48 : index
    %c0_38 = arith.constant 0 : index
    %87 = vector.load %arg4[%c48, %c0_38] : memref<64x256xf32, #tpu.memory_space<vmem>>, vector<8x32xf32>
    %88 = arith.addf %86, %87 : vector<8x32xf32>
    %cst_39 = arith.constant 2.000000e+01 : f32
    %89 = vector.broadcast %cst_39 : f32 to vector<8x32xf32>
    %90 = arith.cmpf ogt, %88, %89 : vector<8x32xf32>
    %cst_40 = arith.constant 2.000000e+01 : f32
    %91 = vector.broadcast %cst_40 : f32 to vector<8x32xf32>
    %92 = arith.minimumf %88, %91 : vector<8x32xf32>
    %93 = math.exp %92 : vector<8x32xf32>
    %94 = math.log1p %93 : vector<8x32xf32>
    %95 = arith.select %90, %88, %94 : vector<8x32xi1>, vector<8x32xf32>
    %cst_41 = arith.constant 0.000000e+00 : f32
    %96 = vector.broadcast %cst_41 : f32 to vector<8x80xf32>
    %97 = tpu.concatenate %37, %95, %96 in 1 : vector<8x16xf32>, vector<8x32xf32>, vector<8x80xf32> -> vector<8x128xf32>
    %c0_42 = arith.constant 0 : index
    %c0_43 = arith.constant 0 : index
    %98 = vector.load %arg5[%c0_42, %c0_43] : memref<8x128xf32, #tpu.memory_space<vmem>>, vector<8x128xf32>
    tpu.vector_store %arg5[%c0_42, %c0_43], %97 {strides = array<i32>} : memref<8x128xf32, #tpu.memory_space<vmem>>, vector<8x128xf32>,
    return
  }
  func.func @transform_0(%arg0: i32) -> (i32, i32) {
    %c0_i32 = arith.constant 0 : i32
    %c0_i32_0 = arith.constant 0 : i32
    return %arg0, %c0_i32 : i32, i32
  }
  func.func @transform_1(%arg0: i32) -> (i32, i32) {
    %c0_i32 = arith.constant 0 : i32
    %c0_i32_0 = arith.constant 0 : i32
    return %arg0, %c0_i32 : i32, i32
  }
  func.func @transform_2(%arg0: i32) -> (i32, i32) {
    %c0_i32 = arith.constant 0 : i32
    %c0_i32_0 = arith.constant 0 : i32
    %c0_i32_1 = arith.constant 0 : i32
    return %c0_i32, %c0_i32_0 : i32, i32
  }
  func.func @transform_3(%arg0: i32) -> (i32, i32) {
    %c0_i32 = arith.constant 0 : i32
    %c0_i32_0 = arith.constant 0 : i32
    %c0_i32_1 = arith.constant 0 : i32
    return %c0_i32, %c0_i32_0 : i32, i32
  }
  func.func @transform_4(%arg0: i32) -> (i32, i32) {
    %c0_i32 = arith.constant 0 : i32
    %c0_i32_0 = arith.constant 0 : i32
    return %arg0, %c0_i32 : i32, i32
  }
}

</mosaic_0001>

<bundles_post_ra>
// kernel: tpu_custom_call.1
= control target key start
LH: loop header
LB: loop body
LE: loop exit
PB: predicated region body
PF: predicated region fallthrough
CT: control target
= control target key end

     0   :  { %9 = vsyncpa [#allocation3], 0  ;;  %s1321_s0 = inlined_call_operand.hbm [shape: f32[8,16], index: 0, kind: input, shape index: {}]   ;;  %s1322_s1 = inlined_call_operand.hbm [shape: f32[8,16], index: 1, kind: input, shape index: {}]   ;;  %s1323_s2 = inlined_call_operand.hbm [shape: bf16[448,256], index: 2, kind: input, shape index: {}]   ;;  %s1324_s3 = inlined_call_operand.hbm [shape: f32[64,256], index: 3, kind: input, shape index: {}]   ;;  %s1325_s4 = inlined_call_operand.hbm [shape: f32[8,128], index: 4, kind: output, shape index: {}]  }
   0x1   :  { %10 = vsyncpa [#allocation6], 0 }
   0x2   :  { %11 = vsyncpa [#allocation9], 0 }
   0x3   :  { %12 = vsyncpa [#allocation4], 0  ;;  %s1175_s15 = smov [#allocation5]   ;;  %s1176_s17 = smov [#allocation2]  }
   0x4   :  { %s29_s16 = sshll.u32 %s1175_s15, 4  ;;  %s19_s18 = sshll.u32 %s1176_s17, 4  ;;  %s30_s16 = int_to_ptr.vmem [resolvable:$true] %s29_s16  ;;  %s20_s18 = int_to_ptr.vmem [resolvable:$true] %s19_s18 }
   0x5   :  { %s1057_s21 = scalar_lea.hbm %s1322_s1, 128 }
   0x6   :  { %p1058_p0 = scmp.ne.s32.totalorder %s1322_s1, %s1057_s21  ;;  %p1061_p1 = scmp.lt.u32.totalorder %s1057_s21, %s1322_s1 }
   0x8   :  { %p1063_p2 = pnand %p1061_p1, %p1058_p0 }
   0xa   :  { %1066 = shalt.err (!%p1063_p2)
}
   0xb   :  { %s1067_s26 = scalar_lea.vmem %s30_s16, 128  ;;  %p1072_p4 = scmp.lt.s32.totalorder %s30_s16, %s30_s16 }
   0xc   :  { %p1068_p3 = scmp.ne.s32.totalorder %s30_s16, %s1067_s26  ;;  %p1073_p5 = scmp.lt.s32.totalorder %s1067_s26, %s1067_s26 }
   0xe   :  { %p1074_p6 = por %p1073_p5, %p1072_p4 }
  0x10   :  { %p1075_p7 = pnand %p1074_p6, %p1068_p3 }
  0x12   :  { %1078 = shalt.err (!%p1075_p7)
}
  0x13   :  { %32 = dma.hbm_to_vmem [thread:$0]  %s1322_s1, 128, %s30_s16, [#allocation6]  }
  0x14   :  { %s1079_s5 = scalar_lea.hbm %s1321_s0, 128 }
  0x15   :  { %p1080_p8 = scmp.ne.s32.totalorder %s1321_s0, %s1079_s5  ;;  %p1083_p9 = scmp.lt.u32.totalorder %s1079_s5, %s1321_s0 }
  0x17   :  { %p1085_p10 = pnand %p1083_p9, %p1080_p8 }
  0x19   :  { %1088 = shalt.err (!%p1085_p10)
}
  0x1a   :  { %s1089_s10 = scalar_lea.vmem %s20_s18, 128  ;;  %p1094_p12 = scmp.lt.s32.totalorder %s20_s18, %s20_s18 }
  0x1b   :  { %p1090_p11 = scmp.ne.s32.totalorder %s20_s18, %s1089_s10  ;;  %p1095_p13 = scmp.lt.s32.totalorder %s1089_s10, %s1089_s10 }
  0x1d   :  { %p1096_p0 = por %p1095_p13, %p1094_p12 }
  0x1f   :  { %p1097_p1 = pnand %p1096_p0, %p1090_p11 }
  0x21   :  { %1100 = shalt.err (!%p1097_p1)
}
  0x22   :  { %22 = dma.hbm_to_vmem [thread:$0]  %s1321_s0, 128, %s20_s18, [#allocation3]  }
  0x23   :  { %s1177_s12 = smov [#allocation7]   ;;  %s1101_s16 = scalar_lea.hbm %s1323_s2, 7168 }
  0x24   :  { %s38_s13 = sshll.u32 %s1177_s12, 4  ;;  %p1102_p2 = scmp.ne.s32.totalorder %s1323_s2, %s1101_s16  ;;  %s39_s13 = int_to_ptr.vmem [resolvable:$true] %s38_s13 }
  0x25   :  { %p1105_p3 = scmp.lt.u32.totalorder %s1101_s16, %s1323_s2 }
  0x27   :  { %p1107_p4 = pnand %p1105_p3, %p1102_p2 }
  0x29   :  { %1110 = shalt.err (!%p1107_p4)
}
  0x2a   :  { %s1111_s22 = scalar_lea.vmem %s39_s13, 7168  ;;  %p1116_p6 = scmp.lt.s32.totalorder %s39_s13, %s39_s13 }
  0x2b   :  { %p1112_p5 = scmp.ne.s32.totalorder %s39_s13, %s1111_s22  ;;  %p1117_p7 = scmp.lt.s32.totalorder %s1111_s22, %s1111_s22 }
  0x2d   :  { %p1118_p8 = por %p1117_p7, %p1116_p6 }
  0x2f   :  { %p1119_p9 = pnand %p1118_p8, %p1112_p5 }
  0x31   :  { %1122 = shalt.err (!%p1119_p9)
}
  0x32   :  { %s1178_s0 = smov 128   ;;  %s1179_s18 = smov 8  }
  0x33   :  { %44 = dma.hbm_to_vmem [thread:$0]  %s1323_s2, 7168, %s39_s13, [#allocation6], %s1178_s0, %s1178_s0, %s1179_s18  }
  0x34   :  { %s1180_s25 = smov [#allocation8]   ;;  %s1123_s29 = scalar_lea.hbm %s1324_s3, 2048 }
  0x35   :  { %s50_s26 = sshll.u32 %s1180_s25, 4  ;;  %p1124_p10 = scmp.ne.s32.totalorder %s1324_s3, %s1123_s29  ;;  %s51_s26 = int_to_ptr.vmem [resolvable:$true] %s50_s26 }
  0x36   :  { %p1127_p11 = scmp.lt.u32.totalorder %s1123_s29, %s1324_s3 }
  0x38   :  { %p1129_p12 = pnand %p1127_p11, %p1124_p10 }
  0x3a   :  { %1132 = shalt.err (!%p1129_p12)
}
  0x3b   :  { %s1133_s8 = scalar_lea.vmem %s51_s26, 2048  ;;  %p1138_p0 = scmp.lt.s32.totalorder %s51_s26, %s51_s26 }
  0x3c   :  { %p1134_p13 = scmp.ne.s32.totalorder %s51_s26, %s1133_s8  ;;  %p1139_p1 = scmp.lt.s32.totalorder %s1133_s8, %s1133_s8 }
  0x3e   :  { %p1140_p2 = por %p1139_p1, %p1138_p0 }
  0x40   :  { %p1141_p3 = pnand %p1140_p2, %p1134_p13 }
  0x42   :  { %1144 = shalt.err (!%p1141_p3)
}
  0x43   :  { %s1181_s2 = smov 256   ;;  %s1182_s9 = smov 16  }
  0x44   :  { %56 = dma.hbm_to_vmem [thread:$0]  %s1324_s3, 2048, %s51_s26, [#allocation9], %s1181_s2, %s1181_s2, %s1182_s9  }
  0x45   :  { %1167 = dma.done.wait [#allocation3], 128  }
  0x46   :  { %1168 = vsyncadd [#allocation3], 4294967168 }
  0x47   :  { %1169 = dma.done.wait [#allocation6], 7296  }
  0x48   :  { %1170 = vsyncadd [#allocation6], 4294960000 }
  0x49   :  { %1171 = dma.done.wait [#allocation9], 2048  }
  0x4a   :  { %1172 = vsyncadd [#allocation9], 4294965248  ;;  %v1183_v0 = vmov 0.0   ;;  %vm1184_vm0 = vmmov 0   ;;  %v1185_v1 = vmov 0   ;;  %v70_v3 = vld [vmem:[#allocation2] sm:$0xff] }
  0x4b   :  { %904 = vmatprep.subr.bf16.mxu0 %v1183_v0  ;;  %906 = vmatprep.mubr.msk.bf16.mxu0 %vm1184_vm0, %v1183_v0  ;;  %v983_v2 = vld [vmem:[#allocation7] ss:$8 sps:$4 sm:$0xff]   ;;  %v72_v4 = vpack.c.bf16 %v70_v3, %v70_v3  ;;  %vm82_vm1 = vcmask 130048   ;;  %v984_v5 = vld [vmem:[#allocation7 + $0x54] ss:$8 sps:$4 sm:$0xff]   ;;  %vm233_vm2 = vcmask 523264  }
  0x4c   :  { %184 = vmatprep.mubr.bf16.mxu1 %v1185_v1  ;;  %905 = vmatpush3.bf16.msra.mxu0 %v983_v2  ;;  %v986_v6 = vld [vmem:[#allocation7 + $0x50] ss:$8 sps:$4 sm:$0xff]   ;;  %v989_v7 = vld [vmem:[#allocation7 + $0x14] ss:$8 sps:$4 sm:$0xff]   ;;  %v992_v11 = vld [vmem:[#allocation7 + $0x24] ss:$8 sps:$4 sm:$0xff]  }
  0x4d   :  { %910 = vmatprep.subr.bf16.mxu0 %v1183_v0  ;;  %152 = vmatprep.subr.bf16.mxu1 %v984_v5  ;;  %v71_v8 = vld [vmem:[#allocation5] sm:$0xff]  ;;  %v990_v12 = vld [vmem:[#allocation7 + $0x20] ss:$8 sps:$4 sm:$0xff]   ;;  %v998_v15 = vld [vmem:[#allocation7 + $0x44] ss:$8 sps:$4 sm:$0xff]   ;;  %s1186_s3 = smov 64  }
  0x4e   :  { %153 = vmatpush1.bf16.msra.mxu1 %v986_v6  ;;  %v987_v9 = vld [vmem:[#allocation7 + $0x10] ss:$8 sps:$4 sm:$0xff]   ;;  %v136_v10 = vpack.c.bf16 %v71_v8, %v71_v8  ;;  %v995_v13 = vld [vmem:[#allocation7 + $0x34] ss:$8 sps:$4 sm:$0xff]   ;;  %v996_v16 = vld [vmem:[#allocation7 + $0x40] ss:$8 sps:$4 sm:$0xff]  }
  0x4f   :  { %907 = vmatmul.mubr.msk.bf16.vlgmr.msra.gmra.mrb[0].mxu0 %vm82_vm1, %v72_v4  ;;  %237 = vmatprep.subr.bf16.mxu1 %v989_v7  ;;  %v993_v14 = vld [vmem:[#allocation7 + $0x30] ss:$8 sps:$4 sm:$0xff]   ;;  %v999_v17 = vld [vmem:[#allocation7 + $0x60] ss:$8 sps:$4 sm:$0xff]   ;;  %v1009_v40 = vld [vmem:[#allocation7 + $0x124] ss:$8 sps:$4 sm:$0xff]  }
  0x50   :  { %918 = vmatprep.mubr.msk.bf16.mxu0 %vm1184_vm0, %v1183_v0  ;;  %911 = vmatpush3.bf16.msra.mxu0 %v999_v17  ;;  %v1000_v18 = vld [vmem:[#allocation7 + $0x70] ss:$8 sps:$4 sm:$0xff]   ;;  %v1001_v19 = vld [vmem:[#allocation7 + $0x80] ss:$8 sps:$4 sm:$0xff]   ;;  %v1012_v3 = vld [vmem:[#allocation7 + $0x134] ss:$8 sps:$4 sm:$0xff]  }
  0x51   :  { %833 = vmatmul.mubr.msk.bf16.vlgmr.msra.gmra.mrb[0].mxu1 %vm82_vm1, %v136_v10  ;;  %912 = vmatprep.subr.bf16.mxu0 %v1183_v0  ;;  %v75_v20 = vld [vmem:[#allocation8] sm:$0xff]  ;;  %v1002_v28 = vld [vmem:[#allocation7 + $0x90] ss:$8 sps:$4 sm:$0xff]   ;;  %v1018_v7 = vld [vmem:[#allocation7 + $0x154] ss:$8 sps:$4 sm:$0xff]   ;;  %vm746_vm3 = vcmask 261120  }
  0x52   :  { %238 = vmatpush1.bf16.msra.mxu1 %v987_v9  ;;  %269 = vmatprep.mubr.bf16.mxu1 %v1185_v1  ;;  %v1003_v36 = vld [vmem:[#allocation7 + $0xa0] ss:$8 sps:$4 sm:$0xff]   ;;  %v1004_v37 = vld [vmem:[#allocation7 + $0xb0] ss:$8 sps:$4 sm:$0xff]   ;;  %v1015_v5 = vld [vmem:[#allocation7 + $0x144] ss:$8 sps:$4 sm:$0xff]  }
  0x53   :  { %239 = vmatprep.subr.bf16.mxu1 %v992_v11  ;;  %v1005_v38 = vld [vmem:[#allocation7 + $0xc0] ss:$8 sps:$4 sm:$0xff]   ;;  %v1006_v39 = vld [vmem:[#allocation7 + $0xd0] ss:$8 sps:$4 sm:$0xff]   ;;  %s1187_s11 = smov [#allocation10]   ;;  %vm809_vm6 = vcmask 392192  }
  0x54   :  { %913 = vmatpush3.bf16.msra.mxu0 %v1000_v18  ;;  %v1019_v50 = vld [vmem:[#allocation7 + $0xe0] ss:$8 sps:$4 sm:$0xff]   ;;  %v1020_v51 = vld [vmem:[#allocation7 + $0xf0] ss:$8 sps:$4 sm:$0xff]   ;;  %s818_s12 = sshll.u32 %s1187_s11, 4  ;;  %s819_s12 = int_to_ptr.vmem [resolvable:$true] %s818_s12 }
  0x55   :  { %914 = vmatprep.subr.bf16.mxu0 %v1183_v0  ;;  %v288_v56 = vld [vmem:[#allocation8 + $0x10] sm:$0xff]  ;;  %v1007_v63 = vld [vmem:[#allocation7 + $0x120] ss:$8 sps:$4 sm:$0xff]   ;;  %s1145_s13 = scalar_lea.vmem %s819_s12, 128  ;;  %p1150_p5 = scmp.lt.s32.totalorder %s819_s12, %s819_s12 }
  0x56   :  { %240 = vmatpush1.bf16.msra.mxu1 %v990_v12  ;;  %v1010_v4 = vld [vmem:[#allocation7 + $0x130] ss:$8 sps:$4 sm:$0xff]   ;;  %v1013_v6 = vld [vmem:[#allocation7 + $0x140] ss:$8 sps:$4 sm:$0xff]   ;;  %p1146_p4 = scmp.ne.s32.totalorder %s819_s12, %s1145_s13  ;;  %p1151_p6 = scmp.lt.s32.totalorder %s1145_s13, %s1145_s13 }
  0x57   :  { %241 = vmatprep.subr.bf16.mxu1 %v995_v13  ;;  %v1016_v8 = vld [vmem:[#allocation7 + $0x150] ss:$8 sps:$4 sm:$0xff]   ;;  %v1021_v10 = vld [vmem:[#allocation7 + $0x100] ss:$8 sps:$4 sm:$0xff]  }
  0x58   :  { %915 = vmatpush3.bf16.msra.mxu0 %v1001_v19  ;;  %v366_v11 = vld [vmem:[#allocation8 + $0x20] sm:$0xff]  ;;  %p1152_p7 = por %p1151_p6, %p1150_p5 }
  0x59   :  { %916 = vmatprep.subr.bf16.mxu0 %v1183_v0  ;;  %v541_v19 = vld [vmem:[#allocation8 + $0x40] sm:$0xff] }
  0x5a   :  { %242 = vmatpush1.bf16.msra.mxu1 %v993_v14  ;;  %p1153_p8 = pnand %p1152_p7, %p1146_p4 }
  0x5b   :  { %243 = vmatprep.subr.bf16.mxu1 %v998_v15 }
  0x5c   :  { %917 = vmatpush3.bf16.msra.mxu0 %v1002_v28 }
  0x5d   :  { %922 = vmatprep.subr.bf16.mxu0 %v1183_v0 }
  0x5e   :  { %244 = vmatpush1.bf16.msra.mxu1 %v996_v16 }
  0x5f   :  { %934 = vmatprep.subr.bf16.mxu1 %v1183_v0 }
 0x122   :  { %v120_v21 = vpop.f32.mrb[0].mxu0 }
 0x123   :  { %v121_v22 = vadd.f32 %v120_v21, %v75_v20  ;;  %v908_v23 = vpop.f32.mrb[1].mxu0 }
 0x124   :  { %v123_v24 = vpop.f32.mrb[2].mxu0  ;;  %v1023_v23 = vld [vmem:[#allocation7 + $0x160] ss:$8 sps:$4 sm:$0xff]  }
 0x125   :  { %v126_v25 = vmax.f32 %v121_v22, 0.0  ;;  %v909_v26 = vpop.f32.mrb[3].mxu0 }
 0x126   :  { %v1024_v26 = vld [vmem:[#allocation7 + $0x170] ss:$8 sps:$4 sm:$0xff]  }
 0x127   :  { %v127_v27 = vpack.c.bf16 %v126_v25, %v126_v25 }
 0x129   :  { %842 = vmatmul.mubr.msk.bf16.vlgmr.msra.gmra.mrb[0].mxu1 %vm233_vm2, %v127_v27  ;;  %v1025_v27 = vld [vmem:[#allocation7 + $0x180] ss:$8 sps:$4 sm:$0xff]  }
 0x12a   :  { %942 = vmatprep.mubr.msk.bf16.mxu1 %vm1184_vm0, %v1183_v0  ;;  %935 = vmatpush3.bf16.msra.mxu1 %v1019_v50  ;;  %v659_v50 = vld [vmem:[#allocation8 + $0x50] sm:$0xff] }
 0x12b   :  { %936 = vmatprep.subr.bf16.mxu1 %v1183_v0 }
 0x12e   :  { %937 = vmatpush3.bf16.msra.mxu1 %v1020_v51 }
 0x12f   :  { %938 = vmatprep.subr.bf16.mxu1 %v1183_v0 }
 0x132   :  { %939 = vmatpush3.bf16.msra.mxu1 %v1021_v10 }
 0x133   :  { %940 = vmatprep.subr.bf16.mxu1 %v1183_v0 }
 0x1fc   :  { %v271_v29 = vpop.f32.mrb[0].mxu1 }
 0x1fd   :  { %v278_v30 = vmax.f32 %v271_v29, 0.0  ;;  %v273_v31 = vpop.f32.mrb[1].mxu1  ;;  %v858_v41 = vmul.f32 -1.442695, %v271_v29  ;;  %v1026_v29 = vld [vmem:[#allocation7 + $0x190] ss:$8 sps:$4 sm:$0xff]  }
 0x1fe   :  { %1029 = vtanh.f32 %v273_v31  ;;  %v275_v32 = vpop.f32.mrb[2].mxu1  ;;  %v859_v42 = vmul.f32 -1.442695, %v273_v31 }
 0x1ff   :  { %v279_v33 = vpack.c.bf16 %v278_v30, %v278_v30  ;;  %v276_v34 = vpop.f32.mrb[3].mxu1  ;;  %1031 = vpow2.f32 %v858_v41  ;;  %v1027_v30 = vld [vmem:[#allocation7 + $0x1a0] ss:$8 sps:$4 sm:$0xff]  }
 0x200   :  { %1033 = vpow2.f32 %v859_v42  ;;  %v542_v32 = vld [vmem:[#allocation8 + $0x48] sm:$0xff] }
 0x201   :  { %919 = vmatmul.mubr.msk.bf16.vlgmr.msra.gmra.mrb[4].mxu0 %vm233_vm2, %v279_v33 }
 0x202   :  { %930 = vmatprep.mubr.msk.bf16.mxu0 %vm1184_vm0, %v1183_v0  ;;  %923 = vmatpush3.bf16.msra.mxu0 %v1003_v36 }
 0x203   :  { %924 = vmatprep.subr.bf16.mxu0 %v1183_v0 }
 0x206   :  { %925 = vmatpush3.bf16.msra.mxu0 %v1004_v37 }
 0x207   :  { %926 = vmatprep.subr.bf16.mxu0 %v1183_v0 }
 0x208   :  { %v1030_v35 = vpop.eup %1029 }
 0x209   :  { %526 = vrot.lane.b32.xlu0 %v1030_v35, %s1186_s3  ;;  %v1032_v43 = vpop.eup %1031 }
 0x20a   :  { %927 = vmatpush3.bf16.msra.mxu0 %v1005_v38  ;;  %v515_v44 = vadd.f32 1.0, %v1032_v43  ;;  %v1034_v45 = vpop.eup %1033 }
 0x20b   :  { %928 = vmatprep.subr.bf16.mxu0 %v1183_v0  ;;  %v522_v46 = vadd.f32 1.0, %v1034_v45 }
 0x20c   :  { %1035 = vrcp.f32 %v515_v44 }
 0x20d   :  { %1037 = vrcp.f32 %v522_v46 }
 0x20e   :  { %929 = vmatpush3.bf16.msra.mxu0 %v1006_v39 }
 0x20f   :  { %589 = vmatprep.subr.bf16.mxu0 %v1009_v40 }
 0x216   :  { %v1036_v47 = vpop.eup %1035 }
 0x217   :  { %v1038_v52 = vpop.eup %1037 }
 0x27b   :  { %v527_v48 = vpop.permute.xlu0 %526 }
 0x27c   :  { %v529_v49 = vmul.f32 %v1036_v47, %v527_v48 }
 0x27e   :  { %1039 = vtanh.f32 %v529_v49  ;;  %v1028_v49 = vld [vmem:[#allocation7 + $0x1b0] ss:$8 sps:$4 sm:$0xff]  }
 0x288   :  { %v1040_v53 = vpop.eup %1039 }
 0x289   :  { %v531_v54 = vmul.f32 %v1040_v53, %v1038_v52 }
 0x28b   :  { %v532_v55 = vpack.c.bf16 %v531_v54, %v531_v54 }
 0x28d   :  { %544 = vrot.lane.b32.xlu0 %v532_v55, %s1186_s3 }
 0x2d4   :  { %v350_v57 = vpop.f32.mrb[4].mxu0 }
 0x2d5   :  { %v351_v58 = vadd.f32 %v350_v57, %v288_v56  ;;  %v920_v59 = vpop.f32.mrb[5].mxu0 }
 0x2d6   :  { %v353_v60 = vpop.f32.mrb[6].mxu0 }
 0x2d7   :  { %v356_v61 = vmax.f32 %v351_v58, 0.0  ;;  %v921_v62 = vpop.f32.mrb[7].mxu0  ;;  %v733_v58 = vld [vmem:[#allocation8 + $0x60] sm:$0xff] }
 0x2d9   :  { %v357_v2 = vpack.c.bf16 %v356_v61, %v356_v61 }
 0x2db   :  { %931 = vmatmul.mubr.msk.bf16.vlgmr.msra.gmra.mrb[8].mxu0 %vm233_vm2, %v357_v2 }
 0x2dc   :  { %590 = vmatpush1.bf16.msra.mxu0 %v1007_v63  ;;  %621 = vmatprep.mubr.bf16.mxu0 %v1185_v1  ;;  %v1022_v1 = vld [vmem:[#allocation7 + $0x110] ss:$8 sps:$4 sm:$0xff]  }
 0x2dd   :  { %591 = vmatprep.subr.bf16.mxu0 %v1012_v3  ;;  %941 = vmatpush3.bf16.msra.mxu1 %v1022_v1 }
 0x2de   :  { %946 = vmatprep.subr.bf16.mxu1 %v1183_v0 }
 0x2e0   :  { %592 = vmatpush1.bf16.msra.mxu0 %v1010_v4 }
 0x2e1   :  { %593 = vmatprep.subr.bf16.mxu0 %v1015_v5 }
 0x2e4   :  { %594 = vmatpush1.bf16.msra.mxu0 %v1013_v6 }
 0x2e5   :  { %595 = vmatprep.subr.bf16.mxu0 %v1018_v7 }
 0x2e8   :  { %596 = vmatpush1.bf16.msra.mxu0 %v1016_v8 }
 0x2e9   :  { %958 = vmatprep.subr.bf16.mxu0 %v1183_v0 }
 0x2ff   :  { %v545_v9 = vpop.permute.xlu0 %544 }
 0x300   :  { %868 = vmatmul.mubr.msk.bf16.vlgmr.msra.gmra.mrb[12].mxu0 %vm233_vm2, %v545_v9 }
 0x301   :  { %962 = vmatprep.mubr.msk.bf16.mxu0 %vm1184_vm0, %v1183_v0  ;;  %959 = vmatpush3.bf16.msra.mxu0 %v1027_v30 }
 0x302   :  { %960 = vmatprep.subr.bf16.mxu0 %v1183_v0 }
 0x305   :  { %961 = vmatpush3.bf16.msra.mxu0 %v1028_v49 }
 0x3ae   :  { %v428_v12 = vpop.f32.mrb[8].mxu0 }
 0x3af   :  { %v429_v13 = vadd.f32 %v428_v12, %v366_v11  ;;  %v932_v14 = vpop.f32.mrb[9].mxu0 }
 0x3b0   :  { %v431_v15 = vpop.f32.mrb[10].mxu0 }
 0x3b1   :  { %v434_v16 = vmax.f32 %v429_v13, 0.0  ;;  %v933_v17 = vpop.f32.mrb[11].mxu0  ;;  %v444_v13 = vld [vmem:[#allocation8 + $0x30] sm:$0xff] }
 0x3b3   :  { %v435_v18 = vpack.c.bf16 %v434_v16, %v434_v16 }
 0x3b5   :  { %943 = vmatmul.mubr.msk.bf16.vlgmr.msra.gmra.mrb[4].mxu1 %vm233_vm2, %v435_v18 }
 0x3b6   :  { %954 = vmatprep.mubr.msk.bf16.mxu1 %vm1184_vm0, %v1183_v0  ;;  %947 = vmatpush3.bf16.msra.mxu1 %v1023_v23 }
 0x3b7   :  { %948 = vmatprep.subr.bf16.mxu1 %v1183_v0 }
 0x3ba   :  { %949 = vmatpush3.bf16.msra.mxu1 %v1024_v26 }
 0x3bb   :  { %950 = vmatprep.subr.bf16.mxu1 %v1183_v0 }
 0x3be   :  { %951 = vmatpush3.bf16.msra.mxu1 %v1025_v27 }
 0x3bf   :  { %952 = vmatprep.subr.bf16.mxu1 %v1183_v0 }
 0x3c2   :  { %953 = vmatpush3.bf16.msra.mxu1 %v1026_v29 }
 0x3d3   :  { %v623_v20 = vpop.f32.mrb[12].mxu0 }
 0x3d4   :  { %v624_v21 = vadd.f32 %v623_v20, %v541_v19  ;;  %v625_v22 = vpop.f32.mrb[13].mxu0 }
 0x3d5   :  { %v627_v24 = vpop.f32.mrb[14].mxu0  ;;  %v626_v33 = vadd.f32 %v625_v22, %v542_v32 }
 0x3d6   :  { %1041 = vtanh.f32 %v624_v21  ;;  %v628_v25 = vpop.f32.mrb[15].mxu0  ;;  %v869_v31 = vmul.f32 -1.442695, %v624_v21 }
 0x3d7   :  { %v870_v34 = vmul.f32 -1.442695, %v626_v33 }
 0x3d8   :  { %1043 = vpow2.f32 %v869_v31 }
 0x3d9   :  { %1045 = vpow2.f32 %v870_v34 }
 0x3e0   :  { %v1042_v28 = vpop.eup %1041 }
 0x3e1   :  { %644 = vrot.lane.b32.xlu1 %v1042_v28, %s1186_s3 }
 0x3e2   :  { %v1044_v35 = vpop.eup %1043 }
 0x3e3   :  { %v633_v36 = vadd.f32 1.0, %v1044_v35  ;;  %v1046_v37 = vpop.eup %1045 }
 0x3e4   :  { %v640_v38 = vadd.f32 1.0, %v1046_v37 }
 0x3e5   :  { %1047 = vrcp.f32 %v633_v36 }
 0x3e6   :  { %1049 = vrcp.f32 %v640_v38 }
 0x3ef   :  { %v1048_v39 = vpop.eup %1047 }
 0x3f0   :  { %v1050_v42 = vpop.eup %1049 }
 0x453   :  { %v645_v40 = vpop.permute.xlu1 %644 }
 0x454   :  { %v647_v41 = vmul.f32 %v1048_v39, %v645_v40 }
 0x456   :  { %1051 = vtanh.f32 %v647_v41 }
 0x460   :  { %v1052_v43 = vpop.eup %1051 }
 0x461   :  { %v649_v44 = vmul.f32 %v1052_v43, %v1050_v42 }
 0x463   :  { %v650_v0 = vpack.c.bf16 %v649_v44, %v649_v44 }
 0x465   :  { %955 = vmatmul.mubr.msk.bf16.vlgmr.msra.gmra.mrb[8].mxu1 %vm233_vm2, %v650_v0 }
 0x488   :  { %v506_v45 = vpop.f32.mrb[4].mxu1 }
 0x489   :  { %v944_v46 = vpop.f32.mrb[5].mxu1  ;;  %v507_v14 = vadd.f32 %v506_v45, %v444_v13 }
 0x48a   :  { %v509_v47 = vpop.f32.mrb[6].mxu1 }
 0x48b   :  { %v945_v48 = vpop.f32.mrb[7].mxu1 }
 0x538   :  { %v721_v51 = vpop.f32.mrb[8].mxu1 }
 0x539   :  { %v722_v52 = vadd.f32 %v721_v51, %v659_v50  ;;  %v956_v53 = vpop.f32.mrb[9].mxu1 }
 0x53a   :  { %v724_v54 = vpop.f32.mrb[10].mxu1 }
 0x53b   :  { %v727_v55 = vmax.f32 %v722_v52, 0.0  ;;  %v957_v56 = vpop.f32.mrb[11].mxu1 }
 0x53d   :  { %v728_v57 = vpack.c.bf16 %v727_v55, %v727_v55 }
 0x53f   :  { %963 = vmatmul.mubr.msk.bf16.vlgmr.msra.gmra.mrb[16].mxu0 %vm746_vm3, %v728_v57 }
 0x612   :  { %v784_v59 = vpop.f32.mrb[16].mxu0 }
 0x613   :  { %v785_v60 = vadd.f32 %v784_v59, %v733_v58  ;;  %v964_v61 = vpop.f32.mrb[17].mxu0 }
 0x614   :  { %v787_v62 = vpop.f32.mrb[18].mxu0 }
 0x615   :  { %v791_v63 = vmin.f32 %v785_v60, 20.0  ;;  %v965_v2 = vpop.f32.mrb[19].mxu0  ;;  %vm790_vm5 = vcmp.gt.f32.partialorder %v785_v60, 20.0 }
 0x617   :  { %v792_v3 = vmul.f32 1.442695, %v791_v63 }
 0x619   :  { %1053 = vpow2.f32 %v792_v3 }
 0x623   :  { %v1054_v4 = vpop.eup %1053 }
 0x624   :  { %v794_v5 = vadd.f32 1.0, %v1054_v4  ;;  %v797_v6 = vmul.f32 -0.5, %v1054_v4  ;;  %v800_v8 = vand.u32 2147483647, %v1054_v4 }
 0x626   :  { %1055 = vlog2.f32 %v794_v5  ;;  %v798_v7 = vadd.f32 1.0, %v797_v6  ;;  %vm801_vm4 = vcmp.lt.f32.partialorder %v800_v8, 0.0004427343 }
 0x628   :  { %v799_v1 = vmul.f32 %v1054_v4, %v798_v7 }
 0x630   :  { %v1056_v9 = vpop.eup %1055 }
 0x631   :  { %v796_v10 = vmul.f32 0.6931472, %v1056_v9 }
 0x633   :  { %v802_v11 = vsel %vm801_vm4, %v799_v1, %v796_v10 }
 0x634   :  { %v803_v12 = vsel %vm790_vm5, %v785_v60, %v802_v11 }
 0x635   :  { %805 = vrot.lane.b32.xlu1 %v803_v12, %s1182_s9 }
 0x6a7   :  { %v806_v15 = vpop.permute.xlu1 %805 }
 0x6a8   :  { %v808_v16 = vsel %vm82_vm1, %v507_v14, %v806_v15 }
 0x6a9   :  { %v810_v17 = vsel %vm809_vm6, %v808_v16, 0.0 }
 0x6aa   :  { %811 = vst [vmem:[#allocation10] sm:$0xff] %v810_v17 }
 0x6ab   :  { %1156 = shalt.err (!%p1153_p8)
}
 0x6ac   :  { %s1157_s16 = scalar_lea.hbm %s1325_s4, 128 }
 0x6ad   :  { %p1158_p9 = scmp.ne.s32.totalorder %s1325_s4, %s1157_s16  ;;  %p1161_p10 = scmp.lt.u32.totalorder %s1157_s16, %s1325_s4 }
 0x6af   :  { %p1163_p11 = pnand %p1161_p10, %p1158_p9 }
 0x6b1   :  { %1166 = shalt.err (!%p1163_p11)
}
 0x6b2   :  { %821 = dma.vmem_to_hbm [thread:$0]  %s819_s12, 128, %s1325_s4, [#allocation4]  }
 0x6b3   :  { %1173 = dma.done.wait [#allocation4], 128  }
 0x6b4   :  { %1174 = vsyncadd [#allocation4], 4294967168 }
 0x6b5   :  { %825 = vsyncpa [#allocation3], 1 }
 0x6b6   :  { %826 = vsyncpa [#allocation6], 1 }
 0x6b7   :  { %827 = vsyncpa [#allocation9], 1 }
 0x6b8   :  { %828 = vsyncpa [#allocation4], 1 }

</bundles_post_ra>
